<compile_context>
chip_gen: v6e
topology: v6e:2x2x1
jax: 0.10.0
libtpu: 0.0.40
codegen_flags: <defaults>
</compile_context>

<pallas_src>
import jax
import jax.numpy as jnp
from jax.experimental import pallas as pl
from jax.experimental.pallas import tpu as pltpu

# Glycolysis rate constants (from the PyTorch module __init__)
J0 = 2.5
k1 = 100.0
k2 = 6.0
k3 = 16.0
k4 = 100.0
k5 = 1.28
k6 = 12.0
k = 1.8
kappa = 13.0
q = 4.0          # used as an exact integer power (q == 4)
K1 = 0.52
psi = 0.1
N = 1.0
A = 4.0

_LANE = 128                     # TPU lane width
_SUB = 8                        # sublanes per f32 vreg
_MIN_TB = _LANE * _SUB          # 1024 lanes: smallest fully dense tile
_DEFAULT_BLOCK_B = 65536        # lanes per tile (R=512): ~1.8 MB per buffer


def _round_up(x, m):
    return ((x + m - 1) // m) * m


def _glycolysis_kernel(y_ref, o_ref):
    # y_ref / o_ref: (7, R, 128) f32 VMEM tiles.  Species on the leading axis;
    # each species plane is a dense (R sublane x 128 lane) slab.
    S1 = y_ref[0]
    S2 = y_ref[1]
    S3 = y_ref[2]
    S4 = y_ref[3]
    S5 = y_ref[4]
    S6 = y_ref[5]
    S7 = y_ref[6]

    # (S6 / K1) ** 4 as exact repeated multiplication (q == 4).
    r = S6 * (1.0 / K1)
    r2 = r * r
    denom = 1.0 + r2 * r2

    flux1 = k1 * S1 * S6 / denom        # exact divide: VPU/EUP have slack
    f2 = k2 * S2 * (N - S5)
    f3 = k3 * S3 * (A - S6)
    f4 = k4 * S4 * S5
    f6 = k6 * S2 * S5
    fx = kappa * (S4 - S7)

    # Direct per-species dense slab stores (unmasked full-width vst).
    o_ref[0] = J0 - flux1
    o_ref[1] = 2.0 * flux1 - f2 - f6
    o_ref[2] = f2 - f3
    o_ref[3] = f3 - f4 - fx
    o_ref[4] = f2 - f4 - f6
    o_ref[5] = -2.0 * flux1 + 2.0 * f3 - k5 * S6
    o_ref[6] = psi * fx - k * S7


def glycolysis_rhs_species_major(y7b, *, block_b=_DEFAULT_BLOCK_B):
    """Fast path: y7b is species-major (7, B) float32; returns (7, B).

    No transposes, no layout conversion: intended to be used end-to-end by an
    integrator that keeps the ODE state species-major."""
    assert y7b.ndim == 2 and y7b.shape[0] == 7, y7b.shape
    B = y7b.shape[1]
    y7b = y7b.astype(jnp.float32)

    # Tile size: multiple of 1024 lanes (sublane dim multiple of 8, lane 128).
    tb = max(_MIN_TB, (min(block_b, _round_up(B, _MIN_TB)) // _MIN_TB) * _MIN_TB)
    # v7x megacore: when the batch spans >= 4 minimal tiles, make sure the
    # "parallel" grid axis has >= ~4 tiles so both TensorCores stream.
    if B >= 4 * _MIN_TB:
        tb = min(tb, _round_up((B + 3) // 4, _MIN_TB))

    b_pad = pl.cdiv(B, tb) * tb
    if b_pad != B:
        y7b = jnp.pad(y7b, ((0, 0), (0, b_pad - B)))

    R = tb // _LANE                                   # sublane rows per tile
    y3 = y7b.reshape(7, b_pad // _LANE, _LANE)        # free row-major reshape

    out3 = pl.pallas_call(
        _glycolysis_kernel,
        out_shape=jax.ShapeDtypeStruct((7, b_pad // _LANE, _LANE), jnp.float32),
        grid_spec=pltpu.PrefetchScalarGridSpec(
            num_scalar_prefetch=0,
            grid=(b_pad // tb,),
            in_specs=[pl.BlockSpec((7, R, _LANE), lambda i: (0, i, 0))],
            out_specs=pl.BlockSpec((7, R, _LANE), lambda i: (0, i, 0)),
        ),
        compiler_params=pltpu.CompilerParams(
            dimension_semantics=("parallel",),        # v7x: split tiles over 2 TCs
            vmem_limit_bytes=32 * 1024 * 1024,
        ),
    )(y3)

    return out3.reshape(7, b_pad)[:, :B]


def glycolysis_forward(t, y, *, block_b=_DEFAULT_BLOCK_B):
    """Matches glycolysis.forward(t, y): y has total size B*7; returns a
    (B, 7) float32 array of time-derivatives.  `t` is unused (autonomous ODE).

    The (B, 7) interface forces one layout conversion each way; integrators
    should keep state species-major and call glycolysis_rhs_species_major."""
    del t
    yb = jnp.reshape(y, (-1, 7)).astype(jnp.float32)   # y.view(-1, 7)
    dy7 = glycolysis_rhs_species_major(yb.T, block_b=block_b)
    return dy7.T                                       # == torch.stack(..., dim=1)


def _reference(y):
    """Pure-JAX reference mirroring the PyTorch module (y flat or (B,7))."""
    yb = jnp.reshape(y, (-1, 7)).astype(jnp.float32)
    S1, S2, S3, S4, S5, S6, S7 = [yb[:, i] for i in range(7)]
    flux1 = k1 * S1 * S6 / (1.0 + (S6 / K1) ** 4.0)
    dS1 = J0 - flux1
    dS2 = 2.0 * flux1 - k2 * S2 * (N - S5) - k6 * S2 * S5
    dS3 = k2 * S2 * (N - S5) - k3 * S3 * (A - S6)
    dS4 = k3 * S3 * (A - S6) - k4 * S4 * S5 - kappa * (S4 - S7)
    dS5 = k2 * S2 * (N - S5) - k4 * S4 * S5 - k6 * S2 * S5
    dS6 = -2.0 * flux1 + 2.0 * k3 * S3 * (A - S6) - k5 * S6
    dS7 = psi * kappa * (S4 - S7) - k * S7
    return jnp.stack([dS1, dS2, dS3, dS4, dS5, dS6, dS7], axis=1)


if __name__ == "__main__":
    t = jnp.float32(0.0)

    # 1) Module-compatible path: flat y of size B*7, small batch (single tile).
    B_small = 8
    y_small = jax.random.uniform(jax.random.PRNGKey(0), (B_small * 7,),
                                 dtype=jnp.float32, minval=0.1, maxval=2.0)
    out_small = jax.block_until_ready(glycolysis_forward(t, y_small))
    assert out_small.shape == (B_small, 7)
    assert jnp.allclose(out_small, _reference(y_small), atol=1e-4, rtol=1e-4)

    # 2) Species-major fast path (zero transposes), multi-tile grid:
    #    B=3000 pads to 3 x 1024-lane tiles with (7, 8, 128) blocks.
    B_big = 3000
    y_big = jax.random.uniform(jax.random.PRNGKey(1), (7, B_big),
                               dtype=jnp.float32, minval=0.1, maxval=2.0)
    out_big = jax.block_until_ready(
        glycolysis_rhs_species_major(y_big, block_b=1024))
    assert out_big.shape == (7, B_big)
    ref_big = _reference(y_big.T).T
    assert jnp.allclose(out_big, ref_big, atol=1e-4, rtol=1e-4)

    print("KERNEL_OK")
</pallas_src>

<mosaic_0001>
module attributes {stable_mosaic.version = 11 : i64} {
  func.func @_glycolysis_kernel(%arg0: i32, %arg1: memref<7x8x128xf32, #tpu.memory_space<vmem>>, %arg2: memref<7x8x128xf32, #tpu.memory_space<vmem>>) attributes {dimension_semantics = [#tpu.dimension_semantics<parallel>], iteration_bounds = array<i64: 1>, scalar_prefetch = 0 : i64, scratch_operands = 0 : i64, tpu.core_type = #tpu.core_type<tc>, window_params = [{transform_indices = @transform_0, window_bounds = array<i64: 7, 8, 128>}, {transform_indices = @transform_1, window_bounds = array<i64: 7, 8, 128>}]} {
    %c0 = arith.constant 0 : index
    %c0_0 = arith.constant 0 : index
    %c0_1 = arith.constant 0 : index
    %0 = vector.load %arg1[%c0, %c0_0, %c0_1] : memref<7x8x128xf32, #tpu.memory_space<vmem>>, vector<1x8x128xf32>
    %1 = vector.shape_cast %0 : vector<1x8x128xf32> to vector<8x128xf32>
    %c1 = arith.constant 1 : index
    %c0_2 = arith.constant 0 : index
    %c0_3 = arith.constant 0 : index
    %2 = vector.load %arg1[%c1, %c0_2, %c0_3] : memref<7x8x128xf32, #tpu.memory_space<vmem>>, vector<1x8x128xf32>
    %3 = vector.shape_cast %2 : vector<1x8x128xf32> to vector<8x128xf32>
    %c2 = arith.constant 2 : index
    %c0_4 = arith.constant 0 : index
    %c0_5 = arith.constant 0 : index
    %4 = vector.load %arg1[%c2, %c0_4, %c0_5] : memref<7x8x128xf32, #tpu.memory_space<vmem>>, vector<1x8x128xf32>
    %5 = vector.shape_cast %4 : vector<1x8x128xf32> to vector<8x128xf32>
    %c3 = arith.constant 3 : index
    %c0_6 = arith.constant 0 : index
    %c0_7 = arith.constant 0 : index
    %6 = vector.load %arg1[%c3, %c0_6, %c0_7] : memref<7x8x128xf32, #tpu.memory_space<vmem>>, vector<1x8x128xf32>
    %7 = vector.shape_cast %6 : vector<1x8x128xf32> to vector<8x128xf32>
    %c4 = arith.constant 4 : index
    %c0_8 = arith.constant 0 : index
    %c0_9 = arith.constant 0 : index
    %8 = vector.load %arg1[%c4, %c0_8, %c0_9] : memref<7x8x128xf32, #tpu.memory_space<vmem>>, vector<1x8x128xf32>
    %9 = vector.shape_cast %8 : vector<1x8x128xf32> to vector<8x128xf32>
    %c5 = arith.constant 5 : index
    %c0_10 = arith.constant 0 : index
    %c0_11 = arith.constant 0 : index
    %10 = vector.load %arg1[%c5, %c0_10, %c0_11] : memref<7x8x128xf32, #tpu.memory_space<vmem>>, vector<1x8x128xf32>
    %11 = vector.shape_cast %10 : vector<1x8x128xf32> to vector<8x128xf32>
    %c6 = arith.constant 6 : index
    %c0_12 = arith.constant 0 : index
    %c0_13 = arith.constant 0 : index
    %12 = vector.load %arg1[%c6, %c0_12, %c0_13] : memref<7x8x128xf32, #tpu.memory_space<vmem>>, vector<1x8x128xf32>
    %13 = vector.shape_cast %12 : vector<1x8x128xf32> to vector<8x128xf32>
    %cst = arith.constant 1.92307687 : f32
    %14 = vector.broadcast %cst : f32 to vector<8x128xf32>
    %15 = arith.mulf %11, %14 : vector<8x128xf32>
    %16 = arith.mulf %15, %15 : vector<8x128xf32>
    %17 = arith.mulf %16, %16 : vector<8x128xf32>
    %cst_14 = arith.constant 1.000000e+00 : f32
    %18 = vector.broadcast %cst_14 : f32 to vector<8x128xf32>
    %19 = arith.addf %18, %17 : vector<8x128xf32>
    %cst_15 = arith.constant 1.000000e+02 : f32
    %20 = vector.broadcast %cst_15 : f32 to vector<8x128xf32>
    %21 = arith.mulf %20, %1 : vector<8x128xf32>
    %22 = arith.mulf %21, %11 : vector<8x128xf32>
    %23 = arith.divf %22, %19 : vector<8x128xf32>
    %cst_16 = arith.constant 6.000000e+00 : f32
    %24 = vector.broadcast %cst_16 : f32 to vector<8x128xf32>
    %25 = arith.mulf %24, %3 : vector<8x128xf32>
    %cst_17 = arith.constant 1.000000e+00 : f32
    %26 = vector.broadcast %cst_17 : f32 to vector<8x128xf32>
    %27 = arith.subf %26, %9 : vector<8x128xf32>
    %28 = arith.mulf %25, %27 : vector<8x128xf32>
    %cst_18 = arith.constant 1.600000e+01 : f32
    %29 = vector.broadcast %cst_18 : f32 to vector<8x128xf32>
    %30 = arith.mulf %29, %5 : vector<8x128xf32>
    %cst_19 = arith.constant 4.000000e+00 : f32
    %31 = vector.broadcast %cst_19 : f32 to vector<8x128xf32>
    %32 = arith.subf %31, %11 : vector<8x128xf32>
    %33 = arith.mulf %30, %32 : vector<8x128xf32>
    %cst_20 = arith.constant 1.000000e+02 : f32
    %34 = vector.broadcast %cst_20 : f32 to vector<8x128xf32>
    %35 = arith.mulf %34, %7 : vector<8x128xf32>
    %36 = arith.mulf %35, %9 : vector<8x128xf32>
    %cst_21 = arith.constant 1.200000e+01 : f32
    %37 = vector.broadcast %cst_21 : f32 to vector<8x128xf32>
    %38 = arith.mulf %37, %3 : vector<8x128xf32>
    %39 = arith.mulf %38, %9 : vector<8x128xf32>
    %40 = arith.subf %7, %13 : vector<8x128xf32>
    %cst_22 = arith.constant 1.300000e+01 : f32
    %41 = vector.broadcast %cst_22 : f32 to vector<8x128xf32>
    %42 = arith.mulf %41, %40 : vector<8x128xf32>
    %cst_23 = arith.constant 2.500000e+00 : f32
    %43 = vector.broadcast %cst_23 : f32 to vector<8x128xf32>
    %44 = arith.subf %43, %23 : vector<8x128xf32>
    %c0_24 = arith.constant 0 : index
    %c0_25 = arith.constant 0 : index
    %c0_26 = arith.constant 0 : index
    %45 = vector.load %arg2[%c0_24, %c0_25, %c0_26] : memref<7x8x128xf32, #tpu.memory_space<vmem>>, vector<1x8x128xf32>
    %46 = vector.shape_cast %45 : vector<1x8x128xf32> to vector<8x128xf32>
    %47 = vector.shape_cast %44 : vector<8x128xf32> to vector<1x8x128xf32>
    tpu.vector_store %arg2[%c0_24, %c0_25, %c0_26], %47 {strides = array<i32>} : memref<7x8x128xf32, #tpu.memory_space<vmem>>, vector<1x8x128xf32>,
    %cst_27 = arith.constant 2.000000e+00 : f32
    %48 = vector.broadcast %cst_27 : f32 to vector<8x128xf32>
    %49 = arith.mulf %48, %23 : vector<8x128xf32>
    %50 = arith.subf %49, %28 : vector<8x128xf32>
    %51 = arith.subf %50, %39 : vector<8x128xf32>
    %c1_28 = arith.constant 1 : index
    %c0_29 = arith.constant 0 : index
    %c0_30 = arith.constant 0 : index
    %52 = vector.load %arg2[%c1_28, %c0_29, %c0_30] : memref<7x8x128xf32, #tpu.memory_space<vmem>>, vector<1x8x128xf32>
    %53 = vector.shape_cast %52 : vector<1x8x128xf32> to vector<8x128xf32>
    %54 = vector.shape_cast %51 : vector<8x128xf32> to vector<1x8x128xf32>
    tpu.vector_store %arg2[%c1_28, %c0_29, %c0_30], %54 {strides = array<i32>} : memref<7x8x128xf32, #tpu.memory_space<vmem>>, vector<1x8x128xf32>,
    %55 = arith.subf %28, %33 : vector<8x128xf32>
    %c2_31 = arith.constant 2 : index
    %c0_32 = arith.constant 0 : index
    %c0_33 = arith.constant 0 : index
    %56 = vector.load %arg2[%c2_31, %c0_32, %c0_33] : memref<7x8x128xf32, #tpu.memory_space<vmem>>, vector<1x8x128xf32>
    %57 = vector.shape_cast %56 : vector<1x8x128xf32> to vector<8x128xf32>
    %58 = vector.shape_cast %55 : vector<8x128xf32> to vector<1x8x128xf32>
    tpu.vector_store %arg2[%c2_31, %c0_32, %c0_33], %58 {strides = array<i32>} : memref<7x8x128xf32, #tpu.memory_space<vmem>>, vector<1x8x128xf32>,
    %59 = arith.subf %33, %36 : vector<8x128xf32>
    %60 = arith.subf %59, %42 : vector<8x128xf32>
    %c3_34 = arith.constant 3 : index
    %c0_35 = arith.constant 0 : index
    %c0_36 = arith.constant 0 : index
    %61 = vector.load %arg2[%c3_34, %c0_35, %c0_36] : memref<7x8x128xf32, #tpu.memory_space<vmem>>, vector<1x8x128xf32>
    %62 = vector.shape_cast %61 : vector<1x8x128xf32> to vector<8x128xf32>
    %63 = vector.shape_cast %60 : vector<8x128xf32> to vector<1x8x128xf32>
    tpu.vector_store %arg2[%c3_34, %c0_35, %c0_36], %63 {strides = array<i32>} : memref<7x8x128xf32, #tpu.memory_space<vmem>>, vector<1x8x128xf32>,
    %64 = arith.subf %28, %36 : vector<8x128xf32>
    %65 = arith.subf %64, %39 : vector<8x128xf32>
    %c4_37 = arith.constant 4 : index
    %c0_38 = arith.constant 0 : index
    %c0_39 = arith.constant 0 : index
    %66 = vector.load %arg2[%c4_37, %c0_38, %c0_39] : memref<7x8x128xf32, #tpu.memory_space<vmem>>, vector<1x8x128xf32>
    %67 = vector.shape_cast %66 : vector<1x8x128xf32> to vector<8x128xf32>
    %68 = vector.shape_cast %65 : vector<8x128xf32> to vector<1x8x128xf32>
    tpu.vector_store %arg2[%c4_37, %c0_38, %c0_39], %68 {strides = array<i32>} : memref<7x8x128xf32, #tpu.memory_space<vmem>>, vector<1x8x128xf32>,
    %cst_40 = arith.constant -2.000000e+00 : f32
    %69 = vector.broadcast %cst_40 : f32 to vector<8x128xf32>
    %70 = arith.mulf %69, %23 : vector<8x128xf32>
    %cst_41 = arith.constant 2.000000e+00 : f32
    %71 = vector.broadcast %cst_41 : f32 to vector<8x128xf32>
    %72 = arith.mulf %71, %33 : vector<8x128xf32>
    %73 = arith.addf %70, %72 : vector<8x128xf32>
    %cst_42 = arith.constant 1.280000e+00 : f32
    %74 = vector.broadcast %cst_42 : f32 to vector<8x128xf32>
    %75 = arith.mulf %74, %11 : vector<8x128xf32>
    %76 = arith.subf %73, %75 : vector<8x128xf32>
    %c5_43 = arith.constant 5 : index
    %c0_44 = arith.constant 0 : index
    %c0_45 = arith.constant 0 : index
    %77 = vector.load %arg2[%c5_43, %c0_44, %c0_45] : memref<7x8x128xf32, #tpu.memory_space<vmem>>, vector<1x8x128xf32>
    %78 = vector.shape_cast %77 : vector<1x8x128xf32> to vector<8x128xf32>
    %79 = vector.shape_cast %76 : vector<8x128xf32> to vector<1x8x128xf32>
    tpu.vector_store %arg2[%c5_43, %c0_44, %c0_45], %79 {strides = array<i32>} : memref<7x8x128xf32, #tpu.memory_space<vmem>>, vector<1x8x128xf32>,
    %cst_46 = arith.constant 1.000000e-01 : f32
    %80 = vector.broadcast %cst_46 : f32 to vector<8x128xf32>
    %81 = arith.mulf %80, %42 : vector<8x128xf32>
    %cst_47 = arith.constant 1.800000e+00 : f32
    %82 = vector.broadcast %cst_47 : f32 to vector<8x128xf32>
    %83 = arith.mulf %82, %13 : vector<8x128xf32>
    %84 = arith.subf %81, %83 : vector<8x128xf32>
    %c6_48 = arith.constant 6 : index
    %c0_49 = arith.constant 0 : index
    %c0_50 = arith.constant 0 : index
    %85 = vector.load %arg2[%c6_48, %c0_49, %c0_50] : memref<7x8x128xf32, #tpu.memory_space<vmem>>, vector<1x8x128xf32>
    %86 = vector.shape_cast %85 : vector<1x8x128xf32> to vector<8x128xf32>
    %87 = vector.shape_cast %84 : vector<8x128xf32> to vector<1x8x128xf32>
    tpu.vector_store %arg2[%c6_48, %c0_49, %c0_50], %87 {strides = array<i32>} : memref<7x8x128xf32, #tpu.memory_space<vmem>>, vector<1x8x128xf32>,
    return
  }
  func.func @transform_0(%arg0: i32) -> (i32, i32, i32) {
    %c0_i32 = arith.constant 0 : i32
    %c0_i32_0 = arith.constant 0 : i32
    %c0_i32_1 = arith.constant 0 : i32
    return %c0_i32, %arg0, %c0_i32_0 : i32, i32, i32
  }
  func.func @transform_1(%arg0: i32) -> (i32, i32, i32) {
    %c0_i32 = arith.constant 0 : i32
    %c0_i32_0 = arith.constant 0 : i32
    %c0_i32_1 = arith.constant 0 : i32
    return %c0_i32, %arg0, %c0_i32_0 : i32, i32, i32
  }
}

</mosaic_0001>

<bundles_post_ra>
// kernel: tpu_custom_call.1
= control target key start
LH: loop header
LB: loop body
LE: loop exit
PB: predicated region body
PF: predicated region fallthrough
CT: control target
= control target key end

     0   :  { %6 = vsyncpa [#allocation3], 0  ;;  %s179_s0 = inlined_call_operand.hbm [shape: f32[7,8,128], index: 0, kind: input, shape index: {}]   ;;  %s180_s1 = inlined_call_operand.hbm [shape: f32[7,8,128], index: 1, kind: output, shape index: {}]  }
   0x1   :  { %7 = vsyncpa [#allocation4], 0  ;;  %s153_s6 = smov [#allocation2]  }
   0x2   :  { %s13_s7 = sshll.u32 %s153_s6, 4  ;;  %s14_s7 = int_to_ptr.vmem [resolvable:$true] %s13_s7 }
   0x3   :  { %s117_s8 = scalar_lea.vmem %s14_s7, 896  ;;  %p122_p1 = scmp.lt.s32.totalorder %s14_s7, %s14_s7 }
   0x4   :  { %p118_p0 = scmp.ne.s32.totalorder %s14_s7, %s117_s8  ;;  %p123_p2 = scmp.lt.s32.totalorder %s117_s8, %s117_s8 }
   0x6   :  { %p124_p3 = por %p123_p2, %p122_p1 }
   0x8   :  { %p125_p4 = pnand %p124_p3, %p118_p0 }
   0xa   :  { %128 = shalt.err (!%p125_p4)
}
   0xb   :  { %s154_s9 = smov 128   ;;  %s155_s10 = smov 8  }
   0xc   :  { %19 = dma.hbm_to_vmem [thread:$0]  %s179_s0, 896, %s14_s7, [#allocation3], %s154_s9, %s154_s9, %s155_s10  }
   0xd   :  { %149 = dma.done.wait [#allocation3], 896  }
   0xe   :  { %150 = vsyncadd [#allocation3], 4294966400  ;;  %v33_v0 = vld [vmem:[#allocation2 + $0x28] sm:$0xff]  ;;  %v31_v3 = vld [vmem:[#allocation2 + $0x20] sm:$0xff]  ;;  %s156_s0 = smov [#allocation5]  }
   0xf   :  { %v25_v1 = vld [vmem:[#allocation2 + $0x8] sm:$0xff]  ;;  %v36_v2 = vmul.f32 1.9230769, %v33_v0  ;;  %v45_v5 = vsub.f32 1.0, %v31_v3  ;;  %v27_v7 = vld [vmem:[#allocation2 + $0x10] sm:$0xff]  ;;  %v48_v8 = vsub.f32 4.0, %v33_v0 }
  0x10   :  { %v44_v4 = vmul.f32 6.0, %v25_v1  ;;  %v52_v6 = vmul.f32 12.0, %v25_v1  ;;  %v29_v9 = vld [vmem:[#allocation2 + $0x18] sm:$0xff]  ;;  %v35_v10 = vld [vmem:[#allocation2 + $0x30] sm:$0xff]  ;;  %v47_v12 = vmul.f32 16.0, %v27_v7  ;;  %v23_v30 = vld [vmem:[#allocation2] sm:$0xff] }
  0x11   :  { %v37_v11 = vmul.f32 %v36_v2, %v36_v2  ;;  %v50_v14 = vmul.f32 100.0, %v29_v9  ;;  %v54_v15 = vsub.f32 %v29_v9, %v35_v10  ;;  %v82_v21 = vmul.f32 1.8, %v35_v10  ;;  %s91_s13 = sshll.u32 %s156_s0, 4  ;;  %s92_s13 = int_to_ptr.vmem [resolvable:$true] %s91_s13 }
  0x12   :  { %v46_v13 = vmul.f32 %v45_v5, %v44_v4  ;;  %v49_v17 = vmul.f32 %v48_v8, %v47_v12  ;;  %v53_v18 = vmul.f32 %v52_v6, %v31_v3  ;;  %v40_v31 = vmul.f32 100.0, %v23_v30  ;;  %s129_s14 = scalar_lea.vmem %s92_s13, 896  ;;  %p134_p6 = scmp.lt.s32.totalorder %s92_s13, %s92_s13 }
  0x13   :  { %v38_v16 = vmul.f32 %v37_v11, %v37_v11  ;;  %v51_v19 = vmul.f32 %v50_v14, %v31_v3  ;;  %v55_v20 = vmul.f32 13.0, %v54_v15  ;;  %v77_v39 = vmul.f32 1.28, %v33_v0  ;;  %p130_p5 = scmp.ne.s32.totalorder %s92_s13, %s129_s14  ;;  %p135_p7 = scmp.lt.s32.totalorder %s129_s14, %s129_s14 }
  0x14   :  { %v63_v23 = vsub.f32 %v46_v13, %v49_v17  ;;  %v41_v32 = vmul.f32 %v40_v31, %v33_v0  ;;  %v75_v35 = vmul.f32 2.0, %v49_v17 }
  0x15   :  { %v39_v22 = vadd.f32 1.0, %v38_v16  ;;  %v66_v24 = vsub.f32 %v49_v17, %v51_v19  ;;  %v70_v25 = vsub.f32 %v46_v13, %v51_v19  ;;  %v81_v26 = vmul.f32 0.1, %v55_v20  ;;  %p136_p8 = por %p135_p7, %p134_p6 }
  0x16   :  { %65 = vst [vmem:[#allocation5 + $0x10] sm:$0xff] %v63_v23 }
  0x17   :  { %107 = vrcp.f32 %v39_v22  ;;  %v67_v27 = vsub.f32 %v66_v24, %v55_v20  ;;  %v71_v28 = vsub.f32 %v70_v25, %v53_v18  ;;  %v83_v29 = vsub.f32 %v81_v26, %v82_v21  ;;  %p137_p9 = pnand %p136_p8, %p130_p5 }
  0x19   :  { %69 = vst [vmem:[#allocation5 + $0x18] sm:$0xff] %v67_v27  ;;  %73 = vst [vmem:[#allocation5 + $0x20] sm:$0xff] %v71_v28 }
  0x1a   :  { %85 = vst [vmem:[#allocation5 + $0x30] sm:$0xff] %v83_v29 }
  0x24   :  { %v108_v33 = vpop.eup %107 }
  0x25   :  { %v43_v34 = vmul.f32 %v108_v33, %v41_v32 }
  0x27   :  { %v56_v36 = vsub.f32 2.5, %v43_v34  ;;  %v58_v37 = vmul.f32 2.0, %v43_v34  ;;  %v74_v38 = vmul.f32 -2.0, %v43_v34 }
  0x29   :  { %57 = vst [vmem:[#allocation5] sm:$0xff] %v56_v36  ;;  %v59_v40 = vsub.f32 %v58_v37, %v46_v13  ;;  %v76_v41 = vadd.f32 %v75_v35, %v74_v38 }
  0x2b   :  { %v60_v42 = vsub.f32 %v59_v40, %v53_v18  ;;  %v78_v43 = vsub.f32 %v76_v41, %v77_v39 }
  0x2d   :  { %62 = vst [vmem:[#allocation5 + $0x8] sm:$0xff] %v60_v42  ;;  %80 = vst [vmem:[#allocation5 + $0x28] sm:$0xff] %v78_v43 }
  0x2e   :  { %140 = shalt.err (!%p137_p9)
}
  0x2f   :  { %97 = dma.vmem_to_hbm [thread:$0]  %s92_s13, 896, %s180_s1, [#allocation4], %s154_s9, %s154_s9, %s155_s10  }
  0x30   :  { %151 = dma.done.wait [#allocation4], 896  }
  0x31   :  { %152 = vsyncadd [#allocation4], 4294966400 }
  0x32   :  { %101 = vsyncpa [#allocation3], 1 }
  0x33   :  { %102 = vsyncpa [#allocation4], 1 }

</bundles_post_ra>
